<compile_context>
chip_gen: v6e
topology: v6e:2x2x1
jax: 0.10.0
libtpu: 0.0.40
codegen_flags: <defaults>
</compile_context>

<pallas_src>
import math

import jax
import jax.numpy as jnp
from jax.experimental import pallas as pl
from jax.experimental.pallas import tpu as pltpu

LN_EPS = 1e-12                         # LucaGPLM1b / ESM-1b layer-norm epsilon
_INV_SQRT2 = float(1.0 / math.sqrt(2.0))   # Python float -> jaxpr literal


def _round_up(x, m):
    return (x + m - 1) // m * m


def lm_head_kernel(x_ref, wd_ref, bd_ref, gamma_ref, beta_ref,
                   wlm_ref, blm_ref, o_ref, ln_ref):
    # Compute dense -> gelu -> LayerNorm once per row tile, cache in scratch.
    @pl.when(pl.program_id(1) == 0)
    def _():
        x = x_ref[...].astype(jnp.bfloat16)                    # (tm, E)
        # dense: x @ Wd^T  (Wd kept in PyTorch (out, in) layout; contract on E)
        h = jax.lax.dot_general(
            x, wd_ref[...],
            dimension_numbers=(((1,), (1,)), ((), ())),
            preferred_element_type=jnp.float32)
        h = h + bd_ref[...]
        # exact gelu: h * 0.5 * (1 + erf(h / sqrt(2)))  -- f32
        h = h * 0.5 * (1.0 + jax.lax.erf(h * _INV_SQRT2))
        # LayerNorm over last dim (biased variance, eps = 1e-12) -- f32 stats
        mean = jnp.mean(h, axis=-1, keepdims=True)
        hz = h - mean
        var = jnp.mean(hz * hz, axis=-1, keepdims=True)
        ln = hz * jax.lax.rsqrt(var + LN_EPS)
        ln = ln * gamma_ref[...] + beta_ref[...]
        ln_ref[...] = ln.astype(jnp.bfloat16)                  # (tm, E) scratch

    # vocab projection for this (i, j) tile: ln @ Wlm_tile^T + bias
    out = jax.lax.dot_general(
        ln_ref[...], wlm_ref[...],                             # (tm,E)x(tn,E)
        dimension_numbers=(((1,), (1,)), ((), ())),
        preferred_element_type=jnp.float32)
    out = out + blm_ref[...]
    o_ref[...] = out.astype(o_ref.dtype)


def _vmem_capacity_bytes():
    try:
        info = pltpu.get_tpu_info()
        for attr in ("vmem_capacity_bytes", "vmem_bytes"):
            v = getattr(info, attr, None)
            if v:
                return int(v)
    except Exception:
        pass
    return 64 << 20   # conservative (v7x-sized) fallback


def roberta_lm_head(features, dense_w, dense_b, ln_gamma, ln_beta,
                    lm_weight, lm_bias, *, tm=1024, tn=512):
    """features: (B, S, E); dense_w: (E, E); lm_weight: (V, E); lm_bias: (V,)."""
    B, S, E = features.shape
    V = lm_weight.shape[0]
    N = B * S

    # --- tile sizes -------------------------------------------------------
    # tm: large (weight reuse), multiple of 256 where possible, clamped to N.
    tm = max(8, min(tm, _round_up(N, 8)))
    tm = _round_up(tm, 256) if tm >= 256 else _round_up(tm, 8)
    # Megacore guard: keep >= 2 row tiles so both v7x TensorCores have work.
    if N > 8 and pl.cdiv(_round_up(N, 8), tm) < 2:
        tm = _round_up(max(8, _round_up(N, 8) // 2), 8)
    N_pad = _round_up(N, tm)

    # tn: lane-dense multiple of 128 (multiple of 256 when possible).
    tn = max(128, min(tn, _round_up(V, 128)))
    tn = _round_up(tn, 128)
    V_pad = _round_up(V, tn)

    # --- inputs (avoid per-call HBM copies where possible) -----------------
    x2d = features.reshape(N, E)
    if N_pad != N:
        x2d = jnp.pad(x2d, ((0, N_pad - N), (0, 0)))

    # In production these casts/pads should be hoisted (pre-convert params
    # once); here they are skipped entirely when already in the right form.
    wd_bf16 = dense_w if dense_w.dtype == jnp.bfloat16 else dense_w.astype(jnp.bfloat16)
    wlm_bf16 = lm_weight if lm_weight.dtype == jnp.bfloat16 else lm_weight.astype(jnp.bfloat16)
    lm_bias_p = lm_bias
    if V_pad != V:
        wlm_bf16 = jnp.pad(wlm_bf16, ((0, V_pad - V), (0, 0)))
        lm_bias_p = jnp.pad(lm_bias, (0, V_pad - V))

    bd = dense_b.reshape(1, E).astype(jnp.float32)
    gamma = ln_gamma.reshape(1, E).astype(jnp.float32)
    beta = ln_beta.reshape(1, E).astype(jnp.float32)
    blm = lm_bias_p.reshape(1, V_pad).astype(jnp.float32)

    grid = (N_pad // tm, V_pad // tn)
    out_dtype = features.dtype
    out_itemsize = jnp.dtype(out_dtype).itemsize
    in_itemsize = jnp.dtype(x2d.dtype).itemsize

    # --- advisory cost estimate (lm_weight is re-read once per row tile) ---
    n_row_tiles = N_pad // tm
    cost = pl.CostEstimate(
        flops=int(2 * N_pad * E * (E + V_pad)),
        transcendentals=int(N_pad * E),
        bytes_accessed=int(N_pad * E * in_itemsize            # x read
                           + E * E * 2                        # dense W read
                           + n_row_tiles * V_pad * E * 2      # lm W re-reads
                           + N_pad * V_pad * out_itemsize     # logits write
                           + (3 * E + n_row_tiles * V_pad) * 4),
    )

    # --- VMEM budget (includes f32 intermediates) --------------------------
    vmem_est = (2 * tm * E * in_itemsize      # x row tiles (double-buffered)
                + 1 * E * E * 2               # dense W (bf16, single-buffered)
                + 2 * tn * E * 2              # lm W tiles (double-buffered)
                + 2 * tm * tn * out_itemsize  # output tiles
                + tm * E * 2                  # post-LN scratch (bf16)
                + 2 * tm * E * 4              # f32 intermediates at j == 0
                + tm * tn * 4                 # f32 dot result before cast
                + (3 * E + tn) * 4)           # small vectors
    vmem_cap = _vmem_capacity_bytes()
    if vmem_cap <= (64 << 20):                # v7x: leave headroom below 64 MiB
        cap = min(52 << 20, int(vmem_cap * 0.82))
    else:                                     # v5e / v6e: ~80% of 128 MiB
        cap = int(vmem_cap * 0.80)
    vmem_limit = int(min(max(int(vmem_est * 1.25) + (2 << 20), 16 << 20), cap))

    out2d = pl.pallas_call(
        lm_head_kernel,
        out_shape=jax.ShapeDtypeStruct((N_pad, V_pad), out_dtype),
        grid_spec=pltpu.PrefetchScalarGridSpec(
            num_scalar_prefetch=0,
            grid=grid,
            in_specs=[
                pl.BlockSpec((tm, E), lambda i, j: (i, 0)),    # x row tile
                pl.BlockSpec((E, E), lambda i, j: (0, 0),
                             pipeline_mode=pl.Buffered(1)),    # dense W (inv.)
                pl.BlockSpec((1, E), lambda i, j: (0, 0),
                             pipeline_mode=pl.Buffered(1)),    # dense bias
                pl.BlockSpec((1, E), lambda i, j: (0, 0),
                             pipeline_mode=pl.Buffered(1)),    # ln gamma
                pl.BlockSpec((1, E), lambda i, j: (0, 0),
                             pipeline_mode=pl.Buffered(1)),    # ln beta
                pl.BlockSpec((tn, E), lambda i, j: (j, 0)),    # lm W tile
                pl.BlockSpec((1, tn), lambda i, j: (0, j),
                             pipeline_mode=pl.Buffered(1)),    # lm bias tile
            ],
            out_specs=pl.BlockSpec((tm, tn), lambda i, j: (i, j)),
            scratch_shapes=[pltpu.VMEM((tm, E), jnp.bfloat16)],  # post-LN cache
        ),
        compiler_params=pltpu.CompilerParams(
            dimension_semantics=("parallel", "arbitrary"),
            vmem_limit_bytes=vmem_limit),
        cost_estimate=cost,
    )(x2d, wd_bf16, bd, gamma, beta, wlm_bf16, blm)

    if N_pad != N or V_pad != V:
        out2d = out2d[:N, :V]
    return out2d.reshape(B, S, V)


# --- references for validation ---------------------------------------------

def reference_f32(features, dense_w, dense_b, ln_gamma, ln_beta,
                  lm_weight, lm_bias):
    x = features.astype(jnp.float32)
    h = x @ dense_w.T + dense_b
    h = h * 0.5 * (1.0 + jax.lax.erf(h / jnp.sqrt(2.0)))
    mean = jnp.mean(h, axis=-1, keepdims=True)
    hz = h - mean
    var = jnp.mean(hz * hz, axis=-1, keepdims=True)
    ln = hz / jnp.sqrt(var + LN_EPS)
    ln = ln * ln_gamma + ln_beta
    return (ln @ lm_weight.T + lm_bias).astype(features.dtype)


def reference_bf16_matmuls(features, dense_w, dense_b, ln_gamma, ln_beta,
                           lm_weight, lm_bias):
    """Mirrors the kernel's numerics: bf16 matmul operands, f32 accumulation."""
    x = features.astype(jnp.bfloat16)
    h = jax.lax.dot_general(
        x, dense_w.astype(jnp.bfloat16),
        dimension_numbers=(((x.ndim - 1,), (1,)), ((), ())),
        preferred_element_type=jnp.float32) + dense_b
    h = h * 0.5 * (1.0 + jax.lax.erf(h * _INV_SQRT2))
    mean = jnp.mean(h, axis=-1, keepdims=True)
    hz = h - mean
    var = jnp.mean(hz * hz, axis=-1, keepdims=True)
    ln = hz * jax.lax.rsqrt(var + LN_EPS)
    ln = (ln * ln_gamma + ln_beta).astype(jnp.bfloat16)
    out = jax.lax.dot_general(
        ln, lm_weight.astype(jnp.bfloat16),
        dimension_numbers=(((ln.ndim - 1,), (1,)), ((), ())),
        preferred_element_type=jnp.float32) + lm_bias
    return out.astype(features.dtype)


if __name__ == "__main__":
    B, S, E, V = 2, 8, 128, 256   # batch, seq, embed_dim, output_dim (vocab)
    key = jax.random.PRNGKey(0)
    k0, k1, k2, k3, k4, k5 = jax.random.split(key, 6)

    features = jax.random.normal(k0, (B, S, E), dtype=jnp.float32)
    dense_w = jax.random.normal(k1, (E, E), dtype=jnp.float32) * (1.0 / math.sqrt(E))
    dense_b = jax.random.normal(k2, (E,), dtype=jnp.float32) * 0.02
    ln_gamma = jnp.ones((E,), dtype=jnp.float32) + 0.1 * jax.random.normal(k3, (E,))
    ln_beta = 0.05 * jax.random.normal(k4, (E,), dtype=jnp.float32)
    # `weight` in the module is the (tied) embedding matrix: (output_dim, embed_dim)
    lm_weight = jax.random.normal(k5, (V, E), dtype=jnp.float32) * (1.0 / math.sqrt(E))
    lm_bias = jnp.zeros((V,), dtype=jnp.float32)   # nn.Parameter(torch.zeros(output_dim))

    out = roberta_lm_head(features, dense_w, dense_b, ln_gamma, ln_beta,
                          lm_weight, lm_bias)
    out = jax.block_until_ready(out)
    assert out.shape == (B, S, V)

    # Tight check vs a reference that matches the kernel's numerics.
    ref_bf16 = reference_bf16_matmuls(features, dense_w, dense_b, ln_gamma,
                                      ln_beta, lm_weight, lm_bias)
    assert jnp.allclose(out, ref_bf16, atol=5e-3, rtol=5e-3)

    # Loose sanity check vs the full-f32 module semantics.
    ref_f32 = reference_f32(features, dense_w, dense_b, ln_gamma, ln_beta,
                            lm_weight, lm_bias)
    assert jnp.allclose(out, ref_f32, atol=5e-2, rtol=5e-2)

    print("KERNEL_OK")
</pallas_src>

<mosaic_0001>
module attributes {stable_mosaic.version = 11 : i64} {
  func.func @lm_head_kernel(%arg0: i32, %arg1: i32, %arg2: memref<8x128xf32, #tpu.memory_space<vmem>>, %arg3: memref<128x128xbf16, #tpu.memory_space<vmem>>, %arg4: memref<1x128xf32, #tpu.memory_space<vmem>>, %arg5: memref<1x128xf32, #tpu.memory_space<vmem>>, %arg6: memref<1x128xf32, #tpu.memory_space<vmem>>, %arg7: memref<256x128xbf16, #tpu.memory_space<vmem>>, %arg8: memref<1x256xf32, #tpu.memory_space<vmem>>, %arg9: memref<8x256xf32, #tpu.memory_space<vmem>>, %arg10: memref<8x128xbf16, #tpu.memory_space<vmem>>) attributes {dimension_semantics = [#tpu.dimension_semantics<parallel>, #tpu.dimension_semantics<arbitrary>], iteration_bounds = array<i64: 2, 1>, scalar_prefetch = 0 : i64, scratch_operands = 1 : i64, tpu.core_type = #tpu.core_type<tc>, window_params = [{transform_indices = @transform_0, window_bounds = array<i64: 8, 128>}, {pipeline_mode = #tpu.pipeline_mode<synchronous>, transform_indices = @transform_1, window_bounds = array<i64: 128, 128>}, {pipeline_mode = #tpu.pipeline_mode<synchronous>, transform_indices = @transform_2, window_bounds = array<i64: 1, 128>}, {pipeline_mode = #tpu.pipeline_mode<synchronous>, transform_indices = @transform_3, window_bounds = array<i64: 1, 128>}, {pipeline_mode = #tpu.pipeline_mode<synchronous>, transform_indices = @transform_4, window_bounds = array<i64: 1, 128>}, {transform_indices = @transform_5, window_bounds = array<i64: 256, 128>}, {pipeline_mode = #tpu.pipeline_mode<synchronous>, transform_indices = @transform_6, window_bounds = array<i64: 1, 256>}, {transform_indices = @transform_7, window_bounds = array<i64: 8, 256>}]} {
    %c0_i32 = arith.constant 0 : i32
    %0 = arith.cmpi eq, %arg1, %c0_i32 : i32
    %1 = arith.extui %0 : i1 to i32
    %c0_i32_0 = arith.constant 0 : i32
    %2 = arith.cmpi ne, %1, %c0_i32_0 : i32
    scf.if %2 {
      %c0_8 = arith.constant 0 : index
      %c0_9 = arith.constant 0 : index
      %10 = vector.load %arg2[%c0_8, %c0_9] : memref<8x128xf32, #tpu.memory_space<vmem>>, vector<8x128xf32>
      %11 = arith.truncf %10 : vector<8x128xf32> to vector<8x128xbf16>
      %c0_10 = arith.constant 0 : index
      %c0_11 = arith.constant 0 : index
      %12 = vector.load %arg3[%c0_10, %c0_11] : memref<128x128xbf16, #tpu.memory_space<vmem>>, vector<128x128xbf16>
      %cst_12 = arith.constant dense<0.000000e+00> : vector<8x128xf32>
      %13 = tpu.matmul %11, %12, %cst_12 {dimension_numbers = #tpu.dot_dimension_numbers<[1], [1], [0], [0], [0, 0, 1, 0], [], []>} : vector<8x128xbf16>, vector<128x128xbf16>, vector<8x128xf32> -> vector<8x128xf32>
      %c0_13 = arith.constant 0 : index
      %c0_14 = arith.constant 0 : index
      %14 = vector.load %arg4[%c0_13, %c0_14] : memref<1x128xf32, #tpu.memory_space<vmem>>, vector<1x128xf32>
      %15 = vector.broadcast %14 : vector<1x128xf32> to vector<8x128xf32>
      %16 = arith.addf %13, %15 : vector<8x128xf32>
      %cst_15 = arith.constant 5.000000e-01 : f32
      %17 = vector.broadcast %cst_15 : f32 to vector<8x128xf32>
      %18 = arith.mulf %16, %17 : vector<8x128xf32>
      %cst_16 = arith.constant 0.707106769 : f32
      %19 = vector.broadcast %cst_16 : f32 to vector<8x128xf32>
      %20 = arith.mulf %16, %19 : vector<8x128xf32>
      %21 = math.erf %20 : vector<8x128xf32>
      %cst_17 = arith.constant 1.000000e+00 : f32
      %22 = vector.broadcast %cst_17 : f32 to vector<8x128xf32>
      %23 = arith.addf %22, %21 : vector<8x128xf32>
      %24 = arith.mulf %18, %23 : vector<8x128xf32>
      %cst_18 = arith.constant dense<0.000000e+00> : vector<8xf32>
      %25 = vector.multi_reduction <add>, %24, %cst_18 [1] : vector<8x128xf32> to vector<8xf32>
      %26 = vector.shape_cast %25 : vector<8xf32> to vector<8x1xf32>
      %cst_19 = arith.constant 1.280000e+02 : f32
      %27 = vector.broadcast %cst_19 : f32 to vector<8x1xf32>
      %28 = arith.divf %26, %27 : vector<8x1xf32>
      %29 = vector.broadcast %28 : vector<8x1xf32> to vector<8x128xf32>
      %30 = arith.subf %24, %29 : vector<8x128xf32>
      %31 = arith.mulf %30, %30 : vector<8x128xf32>
      %cst_20 = arith.constant dense<0.000000e+00> : vector<8xf32>
      %32 = vector.multi_reduction <add>, %31, %cst_20 [1] : vector<8x128xf32> to vector<8xf32>
      %33 = vector.shape_cast %32 : vector<8xf32> to vector<8x1xf32>
      %cst_21 = arith.constant 1.280000e+02 : f32
      %34 = vector.broadcast %cst_21 : f32 to vector<8x1xf32>
      %35 = arith.divf %33, %34 : vector<8x1xf32>
      %cst_22 = arith.constant 9.99999996E-13 : f32
      %36 = vector.broadcast %cst_22 : f32 to vector<8x1xf32>
      %37 = arith.addf %35, %36 : vector<8x1xf32>
      %38 = math.rsqrt %37 : vector<8x1xf32>
      %39 = vector.broadcast %38 : vector<8x1xf32> to vector<8x128xf32>
      %40 = arith.mulf %30, %39 : vector<8x128xf32>
      %c0_23 = arith.constant 0 : index
      %c0_24 = arith.constant 0 : index
      %41 = vector.load %arg5[%c0_23, %c0_24] : memref<1x128xf32, #tpu.memory_space<vmem>>, vector<1x128xf32>
      %42 = vector.broadcast %41 : vector<1x128xf32> to vector<8x128xf32>
      %43 = arith.mulf %40, %42 : vector<8x128xf32>
      %c0_25 = arith.constant 0 : index
      %c0_26 = arith.constant 0 : index
      %44 = vector.load %arg6[%c0_25, %c0_26] : memref<1x128xf32, #tpu.memory_space<vmem>>, vector<1x128xf32>
      %45 = vector.broadcast %44 : vector<1x128xf32> to vector<8x128xf32>
      %46 = arith.addf %43, %45 : vector<8x128xf32>
      %47 = arith.truncf %46 : vector<8x128xf32> to vector<8x128xbf16>
      %c0_27 = arith.constant 0 : index
      %c0_28 = arith.constant 0 : index
      %48 = vector.load %arg10[%c0_27, %c0_28] : memref<8x128xbf16, #tpu.memory_space<vmem>>, vector<8x128xbf16>
      tpu.vector_store %arg10[%c0_27, %c0_28], %47 {strides = array<i32>} : memref<8x128xbf16, #tpu.memory_space<vmem>>, vector<8x128xbf16>,
    } else {
    }
    %c0 = arith.constant 0 : index
    %c0_1 = arith.constant 0 : index
    %3 = vector.load %arg10[%c0, %c0_1] : memref<8x128xbf16, #tpu.memory_space<vmem>>, vector<8x128xbf16>
    %c0_2 = arith.constant 0 : index
    %c0_3 = arith.constant 0 : index
    %4 = vector.load %arg7[%c0_2, %c0_3] : memref<256x128xbf16, #tpu.memory_space<vmem>>, vector<256x128xbf16>
    %cst = arith.constant dense<0.000000e+00> : vector<8x256xf32>
    %5 = tpu.matmul %3, %4, %cst {dimension_numbers = #tpu.dot_dimension_numbers<[1], [1], [0], [0], [0, 0, 1, 0], [], []>} : vector<8x128xbf16>, vector<256x128xbf16>, vector<8x256xf32> -> vector<8x256xf32>
    %c0_4 = arith.constant 0 : index
    %c0_5 = arith.constant 0 : index
    %6 = vector.load %arg8[%c0_4, %c0_5] : memref<1x256xf32, #tpu.memory_space<vmem>>, vector<1x256xf32>
    %7 = vector.broadcast %6 : vector<1x256xf32> to vector<8x256xf32>
    %8 = arith.addf %5, %7 : vector<8x256xf32>
    %c0_6 = arith.constant 0 : index
    %c0_7 = arith.constant 0 : index
    %9 = vector.load %arg9[%c0_6, %c0_7] : memref<8x256xf32, #tpu.memory_space<vmem>>, vector<8x256xf32>
    tpu.vector_store %arg9[%c0_6, %c0_7], %8 {strides = array<i32>} : memref<8x256xf32, #tpu.memory_space<vmem>>, vector<8x256xf32>,
    return
  }
  func.func @transform_0(%arg0: i32, %arg1: i32) -> (i32, i32) {
    %c0_i32 = arith.constant 0 : i32
    %c0_i32_0 = arith.constant 0 : i32
    return %arg0, %c0_i32 : i32, i32
  }
  func.func @transform_1(%arg0: i32, %arg1: i32) -> (i32, i32) {
    %c0_i32 = arith.constant 0 : i32
    %c0_i32_0 = arith.constant 0 : i32
    %c0_i32_1 = arith.constant 0 : i32
    return %c0_i32, %c0_i32_0 : i32, i32
  }
  func.func @transform_2(%arg0: i32, %arg1: i32) -> (i32, i32) {
    %c0_i32 = arith.constant 0 : i32
    %c0_i32_0 = arith.constant 0 : i32
    %c0_i32_1 = arith.constant 0 : i32
    return %c0_i32, %c0_i32_0 : i32, i32
  }
  func.func @transform_3(%arg0: i32, %arg1: i32) -> (i32, i32) {
    %c0_i32 = arith.constant 0 : i32
    %c0_i32_0 = arith.constant 0 : i32
    %c0_i32_1 = arith.constant 0 : i32
    return %c0_i32, %c0_i32_0 : i32, i32
  }
  func.func @transform_4(%arg0: i32, %arg1: i32) -> (i32, i32) {
    %c0_i32 = arith.constant 0 : i32
    %c0_i32_0 = arith.constant 0 : i32
    %c0_i32_1 = arith.constant 0 : i32
    return %c0_i32, %c0_i32_0 : i32, i32
  }
  func.func @transform_5(%arg0: i32, %arg1: i32) -> (i32, i32) {
    %c0_i32 = arith.constant 0 : i32
    %c0_i32_0 = arith.constant 0 : i32
    return %arg1, %c0_i32 : i32, i32
  }
  func.func @transform_6(%arg0: i32, %arg1: i32) -> (i32, i32) {
    %c0_i32 = arith.constant 0 : i32
    %c0_i32_0 = arith.constant 0 : i32
    return %c0_i32, %arg1 : i32, i32
  }
  func.func @transform_7(%arg0: i32, %arg1: i32) -> (i32, i32) {
    %c0_i32 = arith.constant 0 : i32
    return %arg0, %arg1 : i32, i32
  }
}

</mosaic_0001>

<bundles_post_ra>
// kernel: tpu_custom_call.1
= control target key start
LH: loop header
LB: loop body
LE: loop exit
PB: predicated region body
PF: predicated region fallthrough
CT: control target
= control target key end

     0   :  { %s1459_s0 = inlined_call_operand.hbm [shape: f32[16,128], index: 0, kind: input, shape index: {}]   ;;  %s1460_s1 = inlined_call_operand.hbm [shape: bf16[128,128], index: 1, kind: input, shape index: {}]   ;;  %s1461_s2 = inlined_call_operand.vmem [shape: f32[1,128], index: 2, kind: input, shape index: {}]   ;;  %s1462_s3 = inlined_call_operand.vmem [shape: f32[1,128], index: 3, kind: input, shape index: {}]   ;;  %s1463_s4 = inlined_call_operand.vmem [shape: f32[1,128], index: 4, kind: input, shape index: {}]   ;;  %s1464_s5 = inlined_call_operand.hbm [shape: bf16[256,128], index: 5, kind: input, shape index: {}]   ;;  %s1465_s6 = inlined_call_operand.vmem [shape: f32[1,256], index: 6, kind: input, shape index: {}]   ;;  %s1466_s7 = inlined_call_operand.hbm [shape: f32[16,256], index: 7, kind: output, shape index: {}]  }
   0x1   :  { %1471 = sst [smem:[#allocation14_spill]] %s1460_s1 }
   0x2   :  { %1472 = sst [smem:[#allocation15_spill]] %s1464_s5 }
   0x3   :  { %12 = vsyncpa [#allocation4], 0 }
   0x4   :  { %14 = vsyncpa [#allocation4 + $0x1], 0 }
   0x5   :  { %15 = vsyncpa [#allocation7], 0 }
   0x6   :  { %16 = vsyncpa [#allocation5], 0 }
   0x7   :  { %18 = vsyncpa [#allocation5 + $0x1], 0  ;;  %s1257_s24 = smov 0   ;;  %s1259_s25 = smov 0  }
   0x8   :  { %s1261_s26 = smov 0   ;;  %s1263_s27 = smov 0  }
   0x9   :  { %s1265_s28 = smov 0   ;;  %s1267_s29 = smov 0  }
   0xa LB: > { %s834_s30 = sadd.s32 4294967295, %s1207_s29   ;;  %s835_s8 = sadd.s32 4294967294, %s1207_s29   ;;  %s1207_s29 = sphi %s1267_s29, %s24_s29   ;;  %s1203_s28 = sphi %s1265_s28, %s1493_s28   ;;  %s1199_s27 = sphi %s1263_s27, %s1492_s27   ;;  %s1195_s26 = sphi %s1261_s26, %s1491_s26   ;;  %s1191_s25 = sphi %s1259_s25, %s1490_s25   ;;  %s1187_s24 = sphi %s1257_s24, %s1489_s24  }
   0xb   : > { %p56_p0 = scmp.ne.s32.totalorder %s1191_s25, %s1187_s24  ;;  %p1291_p1 = scmp.eq.s32.totalorder %s834_s30, 0 }
   0xc   : > { %p1295_p2 = scmp.eq.s32.totalorder %s834_s30, 1  ;;  %p224_p3 = scmp.eq.s32.totalorder %s835_s8, 1 }
   0xd   : > { %s1473_s9 = scalar_select %p1291_p1, 1, 0 }
   0xe   : > { %p1301_p4 = por %p1291_p1, %p56_p0  ;;  %p836_p5 = scmp.ge.s32.totalorder %s1207_s29, 1 }
   0xf   : > { %p1306_p6 = por %p224_p3, %p56_p0  ;;  %p231_p7 = scmp.lt.s32.totalorder %s1207_s29, 3 }
  0x10   : > { %s1475_s11 = scalar_select %p1301_p4, 1, 0 }
  0x11   : > { %s1476_s12 = scalar_select %p1306_p6, 1, 0 }
  0x12   : > { %p1311_p8 = pnand %p836_p5, %p231_p7  ;;  %s1209_s14 = smov [#allocation6]  }
  0x13   : > { %s243_s15 = sshll.u32 %s1209_s14, 4  ;;  %s1210_s17 = smov [#allocation8]   ;;  %s244_s15 = int_to_ptr.vmem [resolvable:$true] %s243_s15 }
  0x14   : > { %p940_p9 = pneg %p1311_p8  ;;  %s268_s18 = sshll.u32 %s1210_s17, 4  ;;  %s269_s18 = int_to_ptr.vmem [resolvable:$true] %s268_s18 }
  0x15   : > { %s1054_s19 = scalar_lea.vmem %s244_s15, 1024  ;;  %p1062_p5 = scmp.lt.s32.totalorder %s244_s15, %s244_s15 }
  0x16   : > { %p1320_p11 = pnand %p940_p9, %p1291_p1  ;;  %p1055_p13 = scmp.ne.s32.totalorder %s244_s15, %s1054_s19 }
  0x17   : > { %p1063_p7 = scmp.lt.s32.totalorder %s1054_s19, %s1054_s19 }
  0x18   : > { %p1045_p12 = pneg %p1320_p11 }
  0x19   : > { %p1064_p10 = por %p1063_p7, %p1062_p5 }
  0x1a   : > { %p1057_p0 = pnand %p1055_p13, %p1045_p12 }
  0x1c   : > { %p1058_p3 = pneg %p1057_p0 }
  0x1e   : > { %p1065_p9 = pnand %p1064_p10, %p1058_p3 }
  0x20   : > { %1068 = shalt.err (!%p1065_p9)
}
  0x21   : > { %s1211_s20 = smov 64   ;;  %s1212_s21 = smov 4  }
  0x22   : > { %s1479_s1 = sld [smem:[#allocation14_spill]]  ;;  %s1080_s30 = scalar_lea.vmem %s269_s18, 2048 }
  0x23   : > { %p1081_p6 = scmp.ne.s32.totalorder %s269_s18, %s1080_s30  ;;  %p1088_p1 = scmp.lt.s32.totalorder %s269_s18, %s269_s18 }
  0x24   : > { %p1089_p4 = scmp.lt.s32.totalorder %s1080_s30, %s1080_s30 }
  0x25   : > { %p1083_p13 = pnand %p1081_p6, %p1045_p12 }
  0x26   : > { %p1090_p5 = por %p1089_p4, %p1088_p1 }
  0x27   : > { %p1084_p0 = pneg %p1083_p13 }
  0x28   : > { %943 = dma.hbm_to_vmem [thread:$0]  (!%p1320_p11), %s1479_s1, 1024, %s244_s15, [#allocation7], %s1211_s20, %s1211_s20, %s1212_s21  }
  0x29   : > { %p1091_p10 = pnand %p1090_p5, %p1084_p0 }
  0x2b   : > { %1094 = shalt.err (!%p1091_p10)
}
  0x2c   : > { %s1480_s5 = sld [smem:[#allocation15_spill]]  ;;  %s36_s15 = sadd.s32 1, %s1203_s28 }
  0x2d   : > { %s43_s17 = sadd.s32 1, %s1195_s26  ;;  %p38_p1 = scmp.ge.s32.totalorder %s36_s15, 2 }
  0x2e   : > { %p50_p4 = scmp.ne.s32.totalorder %s1195_s26, %s1191_s25  ;;  %p51_p6 = scmp.eq.s32.totalorder %s1207_s29, 0 }
  0x2f   : > { %p957_p12 = scmp.lt.s32.totalorder %s1207_s29, 2  ;;  %s1495_s15 = smov (%p38_p1, %s36_s15), 0 }
  0x30   : > { %1481 = sst [smem:[#allocation13_spill]] %s1495_s15  ;;  %p52_p3 = por %p51_p6, %p50_p4 }
  0x31   : > { %p1352_p7 = por %p1295_p2, %p50_p4  ;;  %s40_s19 = ssub.s32 %s1203_s28, %s1495_s15 }
  0x32   : > { %946 = dma.hbm_to_vmem [thread:$0]  (!%p1320_p11), %s1480_s5, 2048, %s269_s18, [#allocation7], %s1211_s20, %s1211_s20, %s1212_s21  }
  0x33   : > { %s290_s22 = sand.u32 1, %s1195_s26   ;;  %p41_p9 = scmp.eq.s32.totalorder %s40_s19, 0 }
  0x34   : > { %s841_s18 = sshll.u32 %s290_s22, 3  ;;  %s842_s20 = sshll.u32 %s1203_s28, 7 }
  0x35   : > { %s1361_s21 = scalar_select %p41_p9, %s1195_s26, %s43_s17  }
  0x36   : > { %s299_s8 = scalar_lea.hbm %s1459_s0, %s842_s20  ;;  %s294_s14 = scalar_lea.vmem [#allocation3], %s841_s18 }
  0x37   : > { %s301_s1 = sshll.u32 %s294_s14, 4  ;;  %p1368_p11 = pnand %p957_p12, %p52_p3  ;;  %s302_s1 = int_to_ptr.vmem [resolvable:$true] %s301_s1 }
  0x38   : > { %s291_s5 = scalar_lea.sflag [#allocation4], %s290_s22  ;;  %s1108_s19 = scalar_lea.vmem %s302_s1, 128 }
  0x39   : > { %p1097_p2 = pneg %p1368_p11  ;;  %p1109_p13 = scmp.ne.s32.totalorder %s302_s1, %s1108_s19 }
  0x3a   : > { %s1213_s17 = smov [#allocation3]  }
  0x3b   : > { %p1111_p0 = pnand %p1109_p13, %p1097_p2  ;;  %s1113_s15 = sshll.u32 %s1213_s17, 4  ;;  %s1114_s15 = int_to_ptr.vmem [resolvable:$false] %s1113_s15 }
  0x3c   : > { %s1115_s20 = scalar_lea.vmem %s1114_s15, 256  ;;  %p1116_p10 = scmp.lt.s32.totalorder %s302_s1, %s1114_s15 }
  0x3d   : > { %p1112_p5 = pneg %p1111_p0  ;;  %p1117_p1 = scmp.lt.s32.totalorder %s1115_s20, %s1108_s19 }
  0x3f   : > { %p1118_p4 = por %p1117_p1, %p1116_p10 }
  0x41   : > { %p1119_p6 = pnand %p1118_p4, %p1112_p5 }
  0x43   : > { %1122 = shalt.err (!%p1119_p6)
}
  0x44   : > { %950 = dma.hbm_to_vmem [thread:$0]  (!%p1368_p11), %s299_s8, 128, %s302_s1, %s291_s5  }
  0x45   : > { %310 = sbr.rel (%p1311_p8) target bundleno = 886 (0x376), region = 48  ;;  %s1379_s22 = sand.u32 (!%p1311_p8), 1, %s1191_s25  }
  0x46   : > { %s844_s18 = sshll.u32 (!%p1311_p8), %s1379_s22, 3  ;;  %s313_s23 = scalar_lea.sflag (!%p1311_p8), [#allocation4], %s1379_s22 }
  0x47   : > { %s1383_s30 = scalar_lea.vmem (!%p1311_p8), [#allocation3], %s844_s18  ;;  %p1484_p12 = scmp.ne.s32.totalorder (!%p1311_p8), %s1475_s11, 0 }
  0x4a   : > { %1174 = dma.done.wait (%p1484_p12), %s313_s23, 128  }
  0x4b   : > { %1176 = vsyncadd (%p1484_p12), %s313_s23, 4294967168  ;;  %p1485_p3 = scmp.ne.s32.totalorder %s1473_s9, 0 }
  0x4d   : > { %1178 = dma.done.wait (%p1485_p3), [#allocation7], 3072  }
  0x4e   : > { %1180 = vsyncadd (%p1485_p3), [#allocation7], 4294964224  ;;  %v1214_v0 = vmov 0.0   ;;  %vm1215_vm0 = vmmov 0   ;;  %v1015_v1 = vld [vmem:[#allocation6 + $0x38] sm:$0xff]   ;;  %v1016_v2 = vld [vmem:[#allocation6 + $0x30] sm:$0xff]   ;;  %v554_v53 = vlaneseq }
  0x4f   : > { %908 = vmatprep.subr.bf16.mxu0 %v1214_v0  ;;  %924 = vmatprep.mubr.msk.bf16.mxu0 %vm1215_vm0, %v1214_v0  ;;  %v1017_v3 = vld [vmem:[#allocation6 + $0x28] sm:$0xff]   ;;  %v1018_v4 = vld [vmem:[#allocation6 + $0x20] sm:$0xff]   ;;  %v1019_v5 = vld [vmem:[#allocation6 + $0x18] sm:$0xff]   ;;  %s847_s8 = sshll.u32 %s1379_s22, 4  ;;  %s880_s19 = sshll.u32 %s1199_s27, 8 }
  0x50   : > { %909 = vmatpush3.bf16.xpose.msra.mxu0 %v1015_v1  ;;  %v1020_v6 = vld [vmem:[#allocation6 + $0x10] sm:$0xff]   ;;  %v1021_v7 = vld [vmem:[#allocation6 + $0x8] sm:$0xff]   ;;  %v1022_v8 = vld [vmem:[#allocation6] sm:$0xff]   ;;  %v555_v54 = vshrl.u32 %v554_v53, 7  ;;  %s358_s17 = scalar_lea.vmem [#allocation9], %s847_s8  ;;  %s704_s27 = scalar_lea.sflag [#allocation5], %s1379_s22 }
  0x51   : > { %910 = vmatprep.subr.bf16.mxu0 %v1214_v0  ;;  %v371_v9 = vld [vmem:[%s1383_s30] sm:$0xff]  ;;  %v848_v11 = vld [vmem:[%s1461_s2] ss:$0 sm:$0xff]  ;;  %v1029_v28 = vld [vmem:[#allocation8 + $0x60] sm:$0xff]   ;;  %s720_s20 = sshll.u32 %s358_s17, 4  ;;  %s1411_s30 = scalar_lea.hbm %s1466_s7, %s880_s19  ;;  %s1413_s20 = int_to_ptr.vmem [resolvable:$true] %s720_s20 }
  0x52   : > { %v372_v10 = vpack.c.bf16 %v371_v9, %v371_v9  ;;  %v1023_v22 = vld [vmem:[#allocation8 + $0x78] sm:$0xff]   ;;  %v1025_v24 = vld [vmem:[#allocation8 + $0x70] sm:$0xff]   ;;  %v1027_v26 = vld [vmem:[#allocation8 + $0x68] sm:$0xff]   ;;  %v556_v55 = vsub.s32 0, %v555_v54  ;;  %v560_v57 = vsub.s32 1, %v555_v54  ;;  %s1123_s1 = scalar_lea.vmem %s1413_s20, 256 }
  0x53   : > { %v1024_v23 = vld [vmem:[#allocation8 + $0x38] sm:$0xff]   ;;  %890 = vmatprep.subr.bf16.mxu1 %v1023_v22  ;;  %v1026_v25 = vld [vmem:[#allocation8 + $0x30] sm:$0xff]   ;;  %v1028_v27 = vld [vmem:[#allocation8 + $0x28] sm:$0xff]   ;;  %p1124_p8 = scmp.ne.s32.totalorder %s1413_s20, %s1123_s1  ;;  %s1216_s5 = smov [#allocation9]  }
  0x54   : > { %891 = vmatpush3.bf16.xpose.msra.mxu1 %v1024_v23  ;;  %v1030_v29 = vld [vmem:[#allocation8 + $0x20] sm:$0xff]   ;;  %v1031_v34 = vld [vmem:[#allocation8 + $0x58] sm:$0xff]   ;;  %v1033_v36 = vld [vmem:[#allocation8 + $0x50] sm:$0xff]   ;;  %s1127_s9 = sshll.u32 %s1216_s5, 4  ;;  %s1128_s9 = int_to_ptr.vmem [resolvable:$false] %s1127_s9 }
  0x55   : > { %892 = vmatprep.subr.bf16.mxu1 %v1025_v24  ;;  %v1032_v35 = vld [vmem:[#allocation8 + $0x18] sm:$0xff]   ;;  %v1034_v37 = vld [vmem:[#allocation8 + $0x10] sm:$0xff]   ;;  %v1035_v38 = vld [vmem:[#allocation8 + $0x48] sm:$0xff]   ;;  %p1125_p9 = pnand %p1124_p8, %p1352_p7  ;;  %s1129_s11 = scalar_lea.vmem %s1128_s9, 512 }
  0x56   : > { %v1036_v39 = vld [vmem:[#allocation8 + $0x8] sm:$0xff]   ;;  %v1037_v40 = vld [vmem:[#allocation8 + $0x40] sm:$0xff]   ;;  %p1130_p2 = scmp.lt.s32.totalorder %s1413_s20, %s1128_s9  ;;  %p1131_p13 = scmp.lt.s32.totalorder %s1129_s11, %s1123_s1 }
  0x57   : > { %v1038_v41 = vld [vmem:[#allocation8] sm:$0xff]   ;;  %v857_v46 = vld [vmem:[%s1462_s3] ss:$0 sm:$0xff]  ;;  %p1126_p11 = pneg %p1125_p9 }
  0x58   : > { %911 = vmatpush3.bf16.xpose.msra.mxu0 %v1016_v2  ;;  %v858_v48 = vld [vmem:[%s1463_s4] ss:$0 sm:$0xff]  ;;  %p1132_p0 = por %p1131_p13, %p1130_p2 }
  0x59   : > { %912 = vmatprep.subr.bf16.mxu0 %v1214_v0  ;;  %v552_v56 = vld [vmem:[%s1465_s6] sm:$0x3] }
  0x5a   : > { %v557_v58 = vrot.slane %v552_v56, %v556_v55  ;;  %v561_v59 = vrot.slane %v552_v56, %v560_v57  ;;  %p1133_p5 = pnand %p1132_p0, %p1126_p11 }
  0x5c   : > { %893 = vmatpush3.bf16.xpose.msra.mxu1 %v1026_v25 }
  0x5d   : > { %894 = vmatprep.subr.bf16.mxu1 %v1027_v26 }
  0x60   : > { %913 = vmatpush3.bf16.xpose.msra.mxu0 %v1017_v3 }
  0x61   : > { %914 = vmatprep.subr.bf16.mxu0 %v1214_v0 }
  0x64   : > { %895 = vmatpush3.bf16.xpose.msra.mxu1 %v1028_v27 }
  0x65   : > { %896 = vmatprep.subr.bf16.mxu1 %v1029_v28 }
  0x68   : > { %915 = vmatpush3.bf16.xpose.msra.mxu0 %v1018_v4 }
  0x69   : > { %916 = vmatprep.subr.bf16.mxu0 %v1214_v0 }
  0x6c   : > { %897 = vmatpush3.bf16.xpose.msra.mxu1 %v1030_v29 }
  0x6d   : > { %898 = vmatprep.subr.bf16.mxu1 %v1031_v34 }
  0x70   : > { %917 = vmatpush3.bf16.xpose.msra.mxu0 %v1019_v5 }
  0x71   : > { %918 = vmatprep.subr.bf16.mxu0 %v1214_v0 }
  0x74   : > { %899 = vmatpush3.bf16.xpose.msra.mxu1 %v1032_v35 }
  0x75   : > { %900 = vmatprep.subr.bf16.mxu1 %v1033_v36 }
  0x78   : > { %919 = vmatpush3.bf16.xpose.msra.mxu0 %v1020_v6 }
  0x79   : > { %920 = vmatprep.subr.bf16.mxu0 %v1214_v0 }
  0x7c   : > { %901 = vmatpush3.bf16.xpose.msra.mxu1 %v1034_v37 }
  0x7d   : > { %902 = vmatprep.subr.bf16.mxu1 %v1035_v38 }
  0x80   : > { %921 = vmatpush3.bf16.xpose.msra.mxu0 %v1021_v7 }
  0x81   : > { %922 = vmatprep.subr.bf16.mxu0 %v1214_v0 }
  0x84   : > { %903 = vmatpush3.bf16.xpose.msra.mxu1 %v1036_v39 }
  0x85   : > { %904 = vmatprep.subr.bf16.mxu1 %v1037_v40 }
  0x88   : > { %923 = vmatpush3.bf16.xpose.msra.mxu0 %v1022_v8 }
  0x8c   : > { %905 = vmatpush3.bf16.xpose.msra.mxu1 %v1038_v41 }
  0x8f   : > { %925 = vmatmul.mubr.bf16.vlgmr.msra.gmra.mxu0 %v372_v10 }
 0x14f   : > { %v478_v12 = vpop.f32.mrf.mxu0 }
 0x150   : > { %v479_v13 = vadd.f32 %v848_v11, %v478_v12 }
 0x151   : > { %v926_v14 = vpop.f32.mrf.mxu0 }
 0x152   : > { %v485_v15 = vmul.f32 0.70710677, %v479_v13  ;;  %v484_v19 = vmul.f32 0.5, %v479_v13 }
 0x153   : > { %v481_v16 = vpop.f32.mrf.mxu0 }
 0x154   : > { %1039 = verf.f32 %v485_v15 }
 0x155   : > { %v927_v17 = vpop.f32.mrf.mxu0 }
 0x161   : > { %v1040_v18 = vpop.eup %1039 }
 0x162   : > { %v487_v20 = vadd.f32 1.0, %v1040_v18 }
 0x164   : > { %v488_v21 = vmul.f32 %v487_v20, %v484_v19 }
 0x166   : > { %489 = vadd.xlane.f32.xlu0 %v488_v21 }
 0x1ef   : > { %v490_v30 = vpop.xlane.xlu0 %489 }
 0x1f0   : > { %v492_v31 = vmul.f32 0.0078125, %v490_v30 }
 0x1f2   : > { %v493_v32 = vsub.f32 %v488_v21, %v492_v31 }
 0x1f4   : > { %v494_v33 = vmul.f32 %v493_v32, %v493_v32 }
 0x1f6   : > { %495 = vadd.xlane.f32.xlu0 %v494_v33 }
 0x27f   : > { %v496_v42 = vpop.xlane.xlu0 %495 }
 0x280   : > { %v497_v43 = vmul.f32 0.0078125, %v496_v42 }
 0x282   : > { %v498_v44 = vadd.f32 1e-12, %v497_v43 }
 0x284   : > { %1041 = vrsqrt.f32 %v498_v44 }
 0x291   : > { %v1042_v45 = vpop.eup %1041 }
 0x292   : > { %v500_v47 = vmul.f32 %v1042_v45, %v493_v32 }
 0x294   : > { %v508_v49 = vmul.f32 %v857_v46, %v500_v47 }
 0x296   : > { %v516_v50 = vadd.f32 %v858_v48, %v508_v49 }
 0x298   : > { %v517_v51 = vpack.c.bf16 %v516_v50, %v516_v50 }
 0x29a   : > { %518 = vst [vmem:[#allocation2] sm:$0xf] %v517_v51 }
 0x2a1   : > { %v519_v52 = vld [vmem:[#allocation2] sm:$0xf] }
 0x2a2   : > { %906 = vmatprep.mubr.bf16.mxu1 %v519_v52 }
 0x2a3   : > { %907 = vmatmul.mubr.bf16.vlgmr.msra.gmra.mxu1 %v519_v52 }
 0x363   : > { %v694_v60 = vpop.f32.mrf.mxu1 }
 0x364   : > { %v695_v61 = vadd.f32 %v694_v60, %v557_v58 }
 0x365   : > { %v696_v62 = vpop.f32.mrf.mxu1 }
 0x366   : > { %701 = vst [vmem:[%s358_s17] sm:$0xff] %v695_v61  ;;  %v697_v63 = vadd.f32 %v696_v62, %v561_v59 }
 0x367   : > { %v698_v0 = vpop.f32.mrf.mxu1 }
 0x368   : > { %702 = vst [vmem:[%s358_s17 + $0x8] sm:$0xff] %v697_v63 }
 0x369   : > { %v699_v1 = vpop.f32.mrf.mxu1 }
 0x36a   : > { %1136 = shalt.err (!%p1133_p5)
}
 0x36b   : > { %s1137_s13 = scalar_lea.hbm %s1411_s30, 256  ;;  %s1141_s8 = scalar_lea.hbm %s1466_s7, 512 }
 0x36c   : > { %p1138_p10 = scmp.ne.s32.totalorder %s1411_s30, %s1137_s13  ;;  %p1142_p6 = scmp.lt.s32.totalorder %s1411_s30, %s1466_s7 }
 0x36d   : > { %p1143_p12 = scmp.lt.s32.totalorder %s1141_s8, %s1137_s13 }
 0x36e   : > { %p1139_p1 = pnand %p1138_p10, %p1352_p7 }
 0x36f   : > { %p1144_p3 = por %p1143_p12, %p1142_p6 }
 0x370   : > { %p1140_p4 = pneg %p1139_p1 }
 0x372   : > { %p1145_p8 = pnand %p1144_p3, %p1140_p4 }
 0x374   : > { %1148 = shalt.err (!%p1145_p8)
}
 0x375   : > { %938 = dma.vmem_to_hbm [thread:$0]  (%p1352_p7), %s1413_s20, 256, %s1411_s30, %s704_s27  }
 0x376 PF: > { %s732_s19 = sand.u32 1, %s1187_s24   ;;  %p1486_p9 = scmp.ne.s32.totalorder %s1476_s12, 0 }
 0x377   : > { %p1487_p11 = scmp.ge.s32.totalorder %s1207_s29, 2  ;;  %s733_s17 = scalar_lea.sflag [#allocation5], %s732_s19 }
 0x379   : > { %p952_p2 = pnand %p1487_p11, %p1486_p9 }
 0x37b   : > { %p953_p13 = pneg %p952_p2 }
 0x37d   : > { %1182 = dma.done.wait (%p953_p13), %s733_s17, 256  }
 0x37e   : > { %1184 = vsyncadd (%p953_p13), %s733_s17, 4294967040  ;;  %s24_s29 = sadd.s32 1, %s1207_s29   ;;  %s1488_s16 = sld [smem:[#allocation13_spill]] }
 0x37f   : > { %p21_p0 = scmp.ge.s32.totalorder %s24_s29, 4   ;;  %s1489_s24 = smov %s1191_s25 }
 0x380   : > { %s1490_s25 = smov %s1195_s26  ;;  %s1491_s26 = smov %s1361_s21 }
 0x381   : > { %s1492_s27 = smov %s1203_s28  ;;  %23 = sbr.rel (!%p21_p0) target bundleno = 10 (0xa), region = 109 }
 0x384   : > { %s1493_s28 = smov %s1488_s16 }
 0x386   :  { %738 = vsyncpa [#allocation4], 1 }
 0x387   :  { %740 = vsyncpa [#allocation4 + $0x1], 1 }
 0x388   :  { %741 = vsyncpa [#allocation7], 1 }
 0x389   :  { %742 = vsyncpa [#allocation5], 1 }
 0x38a   :  { %744 = vsyncpa [#allocation5 + $0x1], 1 }

</bundles_post_ra>
